<compile_context>
chip_gen: v7x
topology: tpu7x:2x2x1
jax: 0.10.0
libtpu: 0.0.40
codegen_flags: <defaults>
</compile_context>

<pallas_src>
import functools

import jax
import jax.numpy as jnp
import numpy as np
from jax import lax
from jax.experimental import pallas as pl
from jax.experimental.pallas import tpu as pltpu


def _layernorm_kernel(x_ref, g_ref, o_ref, *, eps, inv_c):
    """Channel LayerNorm on a (TB, C, TN) tile.

    x_ref: (TB, C, TN)  channels on sublanes, spatial positions on lanes
    g_ref: (C, 1)       per-channel gain (broadcast over batch & lanes)
    o_ref: (TB, C, TN)
    """
    # Accumulate in f32 regardless of input dtype (removes bf16 accumulation
    # error over channels; required for good numerics on v5e). Essentially
    # free: the kernel is memory-bound and the VPU has huge slack.
    x = x_ref[...].astype(jnp.float32)                        # (TB, C, TN)
    g = g_ref[...].astype(jnp.float32)                        # (C, 1)

    mean = jnp.sum(x, axis=1, keepdims=True) * inv_c          # (TB, 1, TN)
    # Variance over channels; (x - mean) is recomputed below rather than kept
    # live across the reduction (keeps vreg/VMEM pressure down at large C).
    var = jnp.sum((x - mean) * (x - mean), axis=1, keepdims=True) * inv_c

    # rsqrt lowers to the EUP (its own VLIW slot) -> no VPU sqrt/divide.
    inv_std = lax.rsqrt(var + eps)                            # (TB, 1, TN)

    o_ref[...] = ((x - mean) * inv_std * g).astype(o_ref.dtype)


def _round_up(v, m):
    return ((v + m - 1) // m) * m


def layernorm_pallas(x, g, *, eps=None, tile_budget_bytes=2 * 1024 * 1024):
    """x: (b, c, h, w) NCHW;  g: (1, c, 1, 1) learned gain."""
    b, c, h, w = x.shape
    n = h * w

    if eps is None:
        eps = 1e-5 if x.dtype == jnp.float32 else 1e-3

    dsize = jnp.dtype(x.dtype).itemsize

    # ---- Tile selection: fat, lane-dense DMAs, bounded by a per-tile VMEM
    # budget so that 2x(in+out) double buffers (~4x tile bytes) fit under the
    # smallest default scoped VMEM on any generation (v5e: 16 MiB).
    n_pad = _round_up(n, 128)
    max_lanes = max(128, (tile_budget_bytes // max(1, c * dsize)) // 128 * 128)
    tn = min(n_pad, max_lanes)             # lane-dense: multiple of 128
    grid_n = pl.cdiv(n, tn)                # ragged tail masked by Pallas

    # If c * tn is still small (small channel count / image), tile the batch so
    # each grid step moves tb*c*tn elements. Keep >= 2 grid steps when possible
    # so a v7x second TensorCore gets work even at small shapes.
    tb_cap = max(1, min(b, tile_budget_bytes // max(1, c * tn * dsize)))
    if grid_n == 1 and b > 1:
        tb_cap = min(tb_cap, max(1, b // 2))
    tb = 1
    for cand in range(tb_cap, 0, -1):      # largest divisor of b <= tb_cap
        if b % cand == 0:
            tb = cand
            break
    grid_b = b // tb

    x_flat = x.reshape(b, c, n)
    g_col = g.reshape(c, 1)

    kernel = functools.partial(_layernorm_kernel, eps=float(eps), inv_c=1.0 / c)

    out = pl.pallas_call(
        kernel,
        out_shape=jax.ShapeDtypeStruct((b, c, n), x.dtype),
        grid=(grid_b, grid_n),
        in_specs=[
            pl.BlockSpec((tb, c, tn), lambda i, j: (i, 0, j)),   # x tile
            pl.BlockSpec((c, 1), lambda i, j: (0, 0)),           # g (resident)
        ],
        out_specs=pl.BlockSpec((tb, c, tn), lambda i, j: (i, 0, j)),
        compiler_params=pltpu.CompilerParams(
            dimension_semantics=("parallel", "parallel")),
    )(x_flat, g_col)

    return out.reshape(b, c, h, w)


def layernorm_reference(x, g, *, eps=None):
    """Pure-JAX reference matching the PyTorch forward exactly."""
    if eps is None:
        eps = 1e-5 if x.dtype == jnp.float32 else 1e-3
    x32 = x.astype(jnp.float32)
    mean = jnp.mean(x32, axis=1, keepdims=True)
    var = jnp.mean((x32 - mean) ** 2, axis=1, keepdims=True)   # unbiased=False
    out = (x32 - mean) * lax.rsqrt(var + eps) * g.reshape(1, -1, 1, 1).astype(jnp.float32)
    return out.astype(x.dtype)


if __name__ == "__main__":
    key = jax.random.PRNGKey(0)
    kx, kg, kx2, kg2 = jax.random.split(key, 4)

    # Primary check: small NCHW shape, lane-dense spatial extent (16*16 = 256).
    b, dim, h, w = 2, 8, 16, 16
    x = jax.random.normal(kx, (b, dim, h, w), jnp.float32)
    # PyTorch init is ones; perturb so the gain path is actually exercised.
    g = 1.0 + 0.1 * jax.random.normal(kg, (1, dim, 1, 1), jnp.float32)

    out = layernorm_pallas(x, g)
    out = jax.block_until_ready(out)
    ref = layernorm_reference(x, g)
    np.testing.assert_allclose(np.asarray(out), np.asarray(ref),
                               rtol=1e-4, atol=1e-4)

    # Ragged check: spatial extent (10*10 = 100) not a multiple of 128 and a
    # channel count not a multiple of 8 -> exercises the masked-tail path.
    x2 = jax.random.normal(kx2, (3, 12, 10, 10), jnp.float32)
    g2 = 1.0 + 0.1 * jax.random.normal(kg2, (1, 12, 1, 1), jnp.float32)
    out2 = jax.block_until_ready(layernorm_pallas(x2, g2))
    ref2 = layernorm_reference(x2, g2)
    np.testing.assert_allclose(np.asarray(out2), np.asarray(ref2),
                               rtol=1e-4, atol=1e-4)

    print("KERNEL_OK")
</pallas_src>

<mosaic_0001>
module attributes {stable_mosaic.version = 11 : i64} {
  func.func @_layernorm_kernel(%arg0: i32, %arg1: i32, %arg2: memref<1x8x256xf32, #tpu.memory_space<vmem>>, %arg3: memref<8x1xf32, #tpu.memory_space<vmem>>, %arg4: memref<1x8x256xf32, #tpu.memory_space<vmem>>) attributes {dimension_semantics = [#tpu.dimension_semantics<parallel>, #tpu.dimension_semantics<parallel>], iteration_bounds = array<i64: 2, 1>, scalar_prefetch = 0 : i64, scratch_operands = 0 : i64, tpu.core_type = #tpu.core_type<tc>, window_params = [{transform_indices = @transform_0, window_bounds = array<i64: 1, 8, 256>}, {pipeline_mode = #tpu.pipeline_mode<synchronous>, transform_indices = @transform_1, window_bounds = array<i64: 8, 1>}, {transform_indices = @transform_2, window_bounds = array<i64: 1, 8, 256>}]} {
    %c0 = arith.constant 0 : index
    %c0_0 = arith.constant 0 : index
    %c0_1 = arith.constant 0 : index
    %0 = vector.load %arg2[%c0, %c0_0, %c0_1] : memref<1x8x256xf32, #tpu.memory_space<vmem>>, vector<1x8x256xf32>
    %c0_2 = arith.constant 0 : index
    %c0_3 = arith.constant 0 : index
    %1 = vector.load %arg3[%c0_2, %c0_3] : memref<8x1xf32, #tpu.memory_space<vmem>>, vector<8x1xf32>
    %cst = arith.constant dense<0.000000e+00> : vector<1x256xf32>
    %2 = vector.multi_reduction <add>, %0, %cst [1] : vector<1x8x256xf32> to vector<1x256xf32>
    %3 = vector.shape_cast %2 : vector<1x256xf32> to vector<1x1x256xf32>
    %cst_4 = arith.constant 1.250000e-01 : f32
    %4 = vector.broadcast %cst_4 : f32 to vector<1x1x256xf32>
    %5 = arith.mulf %3, %4 : vector<1x1x256xf32>
    %6 = vector.broadcast %5 : vector<1x1x256xf32> to vector<1x8x256xf32>
    %7 = arith.subf %0, %6 : vector<1x8x256xf32>
    %8 = vector.broadcast %5 : vector<1x1x256xf32> to vector<1x8x256xf32>
    %9 = arith.subf %0, %8 : vector<1x8x256xf32>
    %10 = arith.mulf %7, %9 : vector<1x8x256xf32>
    %cst_5 = arith.constant dense<0.000000e+00> : vector<1x256xf32>
    %11 = vector.multi_reduction <add>, %10, %cst_5 [1] : vector<1x8x256xf32> to vector<1x256xf32>
    %12 = vector.shape_cast %11 : vector<1x256xf32> to vector<1x1x256xf32>
    %cst_6 = arith.constant 1.250000e-01 : f32
    %13 = vector.broadcast %cst_6 : f32 to vector<1x1x256xf32>
    %14 = arith.mulf %12, %13 : vector<1x1x256xf32>
    %cst_7 = arith.constant 9.99999974E-6 : f32
    %15 = vector.broadcast %cst_7 : f32 to vector<1x1x256xf32>
    %16 = arith.addf %14, %15 : vector<1x1x256xf32>
    %17 = math.rsqrt %16 : vector<1x1x256xf32>
    %18 = vector.broadcast %5 : vector<1x1x256xf32> to vector<1x8x256xf32>
    %19 = arith.subf %0, %18 : vector<1x8x256xf32>
    %20 = vector.broadcast %17 : vector<1x1x256xf32> to vector<1x8x256xf32>
    %21 = arith.mulf %19, %20 : vector<1x8x256xf32>
    %22 = vector.shape_cast %1 : vector<8x1xf32> to vector<1x8x1xf32>
    %23 = vector.broadcast %22 : vector<1x8x1xf32> to vector<1x8x256xf32>
    %24 = arith.mulf %21, %23 : vector<1x8x256xf32>
    %c0_8 = arith.constant 0 : index
    %c0_9 = arith.constant 0 : index
    %c0_10 = arith.constant 0 : index
    %25 = vector.load %arg4[%c0_8, %c0_9, %c0_10] : memref<1x8x256xf32, #tpu.memory_space<vmem>>, vector<1x8x256xf32>
    tpu.vector_store %arg4[%c0_8, %c0_9, %c0_10], %24 {strides = array<i32>} : memref<1x8x256xf32, #tpu.memory_space<vmem>>, vector<1x8x256xf32>,
    return
  }
  func.func @transform_0(%arg0: i32, %arg1: i32) -> (i32, i32, i32) {
    %c0_i32 = arith.constant 0 : i32
    %c0_i32_0 = arith.constant 0 : i32
    return %arg0, %c0_i32, %arg1 : i32, i32, i32
  }
  func.func @transform_1(%arg0: i32, %arg1: i32) -> (i32, i32) {
    %c0_i32 = arith.constant 0 : i32
    %c0_i32_0 = arith.constant 0 : i32
    %c0_i32_1 = arith.constant 0 : i32
    return %c0_i32, %c0_i32_0 : i32, i32
  }
  func.func @transform_2(%arg0: i32, %arg1: i32) -> (i32, i32, i32) {
    %c0_i32 = arith.constant 0 : i32
    %c0_i32_0 = arith.constant 0 : i32
    return %arg0, %c0_i32, %arg1 : i32, i32, i32
  }
}

</mosaic_0001>

<bundles_post_ra>
// kernel: tpu_custom_call.1
= control target key start
LH: loop header
LB: loop body
LE: loop exit
PB: predicated region body
PF: predicated region fallthrough
CT: control target
= control target key end

     0   :  { %7 = vsyncpa [#allocation3], 0  ;;  %s727_s0 = inlined_call_operand.hbm [shape: f32[2,8,256], index: 0, kind: input, shape index: {}]   ;;  %s728_s1 = inlined_call_operand.vmem [shape: f32[8,1], index: 1, kind: input, shape index: {}]   ;;  %s729_s2 = inlined_call_operand.hbm [shape: f32[2,8,256], index: 2, kind: output, shape index: {}]  }
   0x1   :  { %9 = vsyncpa [#allocation3 + $0x1], 0 }
   0x2   :  { %10 = vsyncpa [#allocation4], 0 }
   0x3   :  { %12 = vsyncpa [#allocation4 + $0x1], 0  ;;  %s548_s9 = smov 0   ;;  %s550_s10 = smov 0  }
   0x4   :  { %s552_s11 = smov 0   ;;  %s554_s12 = smov 0  }
   0x5   :  { %s556_s13 = smov 0   ;;  %s558_s14 = smov 0  }
   0x6 LB: > { %s331_s15 = sadd.s32 4294967295, %s528_s14   ;;  %s332_s16 = sadd.s32 4294967294, %s528_s14   ;;  %s528_s14 = sphi %s558_s14, %s18_s14   ;;  %s524_s13 = sphi %s556_s13, %s745_s13   ;;  %s520_s12 = sphi %s554_s12, %s744_s12   ;;  %s516_s11 = sphi %s552_s11, %s743_s11   ;;  %s512_s10 = sphi %s550_s10, %s742_s10   ;;  %s508_s9 = sphi %s548_s9, %s741_s9  }
   0x7   : > { %s30_s17 = sadd.s32 1, %s524_s13  ;;  %s39_s18 = sadd.s32 1, %s516_s11 }
   0x8   : > { %p32_p0 = scmp.ge.s32.totalorder %s30_s17, 2  ;;  %p46_p1 = scmp.ne.s32.totalorder %s516_s11, %s512_s10 }
   0x9   : > { %p47_p2 = scmp.eq.s32.totalorder %s528_s14, 0  ;;  %p52_p3 = scmp.ne.s32.totalorder %s512_s10, %s508_s9 }
   0xa   : > { %s747_s17 = smov (%p32_p0, %s30_s17), 0  ;;  %p53_p5 = scmp.eq.s32.totalorder %s331_s15, 0 }
   0xb   : > { %p589_p4 = por %p47_p2, %p46_p1  ;;  %s34_s20 = ssub.s32 %s524_s13, %s747_s17 }
   0xc   : > { %p99_p6 = scmp.eq.s32.totalorder %s331_s15, 1  ;;  %p37_p7 = scmp.eq.s32.totalorder %s34_s20, 0 }
   0xd   : > { %p595_p8 = por %p53_p5, %p52_p3  ;;  %p105_p10 = scmp.eq.s32.totalorder %s332_s16, 1 }
   0xe   : > { %p599_p9 = por %p99_p6, %p46_p1  ;;  %p360_p13 = scmp.lt.s32.totalorder %s528_s14, 2 }
   0xf   : > { %s604_s23 = scalar_select %p37_p7, %s516_s11, %s39_s18  }
  0x10   : > { %s733_s22 = scalar_select %p599_p9, 1, 0 }
  0x11   : > { %p606_p11 = por %p105_p10, %p52_p3  ;;  %s128_s25 = sand.u32 1, %s516_s11  }
  0x12   : > { %s335_s26 = sshll.u32 %s128_s25, 4  ;;  %s346_s27 = sshll.u32 %s524_s13, 8 }
  0x13   : > { %s734_s24 = scalar_select %p606_p11, 1, 0 }
  0x14   : > { %s617_s30 = scalar_lea.hbm %s727_s0, %s346_s27  ;;  %s132_s3 = scalar_lea.vmem [#allocation2], %s335_s26 }
  0x15   : > { %s142_s4 = sshll.u32 %s132_s3, 4  ;;  %p623_p0 = pnand %p360_p13, %p589_p4  ;;  %s619_s4 = int_to_ptr.vmem [resolvable:$true] %s142_s4 }
  0x16   : > { %s129_s6 = scalar_lea.sflag [#allocation3], %s128_s25  ;;  %s416_s7 = scalar_lea.hbm %s617_s30, 256 }
  0x17   : > { %p417_p3 = scmp.ne.s32.totalorder %s617_s30, %s416_s7  ;;  %p418_p5 = pneg %p623_p0 }
  0x18   : > { %s421_s16 = scalar_lea.hbm %s727_s0, 512  ;;  %p422_p4 = scmp.lt.u32.totalorder %s617_s30, %s727_s0 }
  0x19   : > { %p419_p6 = pnand %p418_p5, %p417_p3  ;;  %p423_p10 = scmp.lt.u32.totalorder %s421_s16, %s416_s7 }
  0x1a   : > { %p425_p12 = scmp.lt.u32.totalorder %s416_s7, %s617_s30 }
  0x1b   : > { %p420_p7 = pneg %p419_p6  ;;  %p424_p13 = por %p423_p10, %p422_p4 }
  0x1d   : > { %p426_p1 = por %p425_p12, %p424_p13 }
  0x1f   : > { %p427_p2 = pnand %p426_p1, %p420_p7 }
  0x21   : > { %430 = shalt.err (!%p427_p2)
}
  0x22   : > { %s431_s20 = scalar_lea.vmem %s619_s4, 256  ;;  %s530_s25 = smov [#allocation2]  }
  0x23   : > { %p432_p3 = scmp.ne.s32.totalorder %s619_s4, %s431_s20  ;;  %s436_s26 = sshll.u32 %s530_s25, 4  ;;  %s437_s26 = int_to_ptr.vmem [resolvable:$false] %s436_s26 }
  0x24   : > { %s438_s27 = scalar_lea.vmem %s437_s26, 512  ;;  %p439_p9 = scmp.lt.s32.totalorder %s619_s4, %s437_s26 }
  0x25   : > { %p434_p6 = pnand %p432_p3, %p418_p5  ;;  %p440_p4 = scmp.lt.s32.totalorder %s438_s27, %s431_s20 }
  0x27   : > { %p435_p11 = pneg %p434_p6  ;;  %p441_p10 = por %p440_p4, %p439_p9 }
  0x29   : > { %p442_p12 = pnand %p441_p10, %p435_p11 }
  0x2b   : > { %445 = shalt.err (!%p442_p12)
}
  0x2c   : > { %355 = dma.hbm_to_vmem [thread:$0]  (!%p623_p0), %s617_s30, 256, %s619_s4, %s129_s6  }
  0x2d   : > { %p736_p1 = scmp.lt.s32.totalorder %s528_s14, 3  ;;  %p737_p2 = scmp.ge.s32.totalorder %s528_s14, 1 }
  0x2f   : > { %p148_p5 = pnand %p737_p2, %p736_p1 }
  0x30   : > { %s659_s28 = sand.u32 (!%p148_p5), 1, %s512_s10  }
  0x31   : > { %151 = sbr.rel (%p148_p5) target bundleno = 203 (0xcb), region = 28  ;;  %s339_s29 = sshll.u32 (!%p148_p5), %s659_s28, 4 }
  0x32   : > { %s154_s3 = scalar_lea.sflag (!%p148_p5), [#allocation3], %s659_s28  ;;  %s157_s5 = scalar_lea.vmem (!%p148_p5), [#allocation2], %s339_s29 }
  0x38   : > { %499 = dma.done.wait (%p595_p8), %s154_s3, 256  }
  0x39   : > { %501 = vsyncadd (%p595_p8), %s154_s3, 4294967040  ;;  %v531_v0 = vmov 0   ;;  %v182_v1 = vld [vmem:[%s728_s1] sm:$0xff]  ;;  %v181_v3 = vld [vmem:[%s157_s5 + $0x8] sm:$0xff]  ;;  %s347_s21 = sshll.u32 %s520_s12, 8  ;;  %s177_s6 = scalar_lea.vmem [#allocation5], %s339_s29 }
  0x3a   : > { %411 = vset.pattern.permute.xlu0 %v531_v0  ;;  %v180_v2 = vld [vmem:[%s157_s5] sm:$0xff]  ;;  %v189_v5 = vrot.slane %v181_v3, 4  ;;  %s247_s7 = sshll.u32 %s177_s6, 4  ;;  %s678_s16 = scalar_lea.hbm %s729_s2, %s347_s21  ;;  %s680_s7 = int_to_ptr.vmem [resolvable:$true] %s247_s7 }
  0x3b   : > { %223 = vperm.xlu0 %411, %v182_v1   ;;  %v183_v4 = vrot.slane %v180_v2, 4  ;;  %s231_s18 = scalar_lea.sflag [#allocation4], %s659_s28  ;;  %s446_s12 = scalar_lea.vmem %s680_s7, 256 }
  0x3c   : > { %v190_v7 = vadd.f32 %v189_v5, %v181_v3  ;;  %p447_p8 = scmp.ne.s32.totalorder %s680_s7, %s446_s12  ;;  %p738_p9 = scmp.ne.s32.totalorder %s733_s22, 0 }
  0x3d   : > { %v184_v6 = vadd.f32 %v183_v4, %v180_v2  ;;  %s532_s19 = smov [#allocation5]  }
  0x3e   : > { %v191_v9 = vrot.slane %v190_v7, 2  ;;  %p448_p11 = pnand %p447_p8, %p738_p9  ;;  %s450_s20 = sshll.u32 %s532_s19, 4  ;;  %s451_s20 = int_to_ptr.vmem [resolvable:$false] %s450_s20 }
  0x3f   : > { %v185_v8 = vrot.slane %v184_v6, 2  ;;  %s452_s25 = scalar_lea.vmem %s451_s20, 512  ;;  %p453_p7 = scmp.lt.s32.totalorder %s680_s7, %s451_s20 }
  0x40   : > { %v192_v11 = vadd.f32 %v191_v9, %v190_v7  ;;  %p449_p0 = pneg %p448_p11  ;;  %p454_p13 = scmp.lt.s32.totalorder %s452_s25, %s446_s12 }
  0x41   : > { %v186_v10 = vadd.f32 %v185_v8, %v184_v6 }
  0x42   : > { %v193_v13 = vrot.slane %v192_v11, 1  ;;  %p455_p3 = por %p454_p13, %p453_p7 }
  0x43   : > { %v187_v12 = vrot.slane %v186_v10, 1 }
  0x44   : > { %v194_v15 = vadd.f32 %v193_v13, %v192_v11  ;;  %p456_p6 = pnand %p455_p3, %p449_p0 }
  0x45   : > { %v188_v14 = vadd.f32 %v187_v12, %v186_v10 }
  0x46   : > { %v196_v17 = vmul.f32 0.125, %v194_v15 }
  0x47   : > { %v195_v16 = vmul.f32 0.125, %v188_v14 }
  0x48   : > { %v198_v19 = vsub.f32 %v181_v3, %v196_v17 }
  0x49   : > { %v197_v18 = vsub.f32 %v180_v2, %v195_v16 }
  0x4a   : > { %v200_v21 = vmul.f32 %v198_v19, %v198_v19 }
  0x4b   : > { %v199_v20 = vmul.f32 %v197_v18, %v197_v18 }
  0x4c   : > { %v207_v23 = vrot.slane %v200_v21, 4 }
  0x4d   : > { %v201_v22 = vrot.slane %v199_v20, 4 }
  0x4e   : > { %v208_v25 = vadd.f32 %v207_v23, %v200_v21 }
  0x4f   : > { %v202_v24 = vadd.f32 %v201_v22, %v199_v20 }
  0x50   : > { %v209_v27 = vrot.slane %v208_v25, 2 }
  0x51   : > { %v203_v26 = vrot.slane %v202_v24, 2 }
  0x52   : > { %v210_v29 = vadd.f32 %v209_v27, %v208_v25 }
  0x53   : > { %v204_v28 = vadd.f32 %v203_v26, %v202_v24 }
  0x54   : > { %v211_v31 = vrot.slane %v210_v29, 1 }
  0x55   : > { %v205_v30 = vrot.slane %v204_v28, 1 }
  0x56   : > { %v212_v33 = vadd.f32 %v211_v31, %v210_v29 }
  0x57   : > { %v206_v32 = vadd.f32 %v205_v30, %v204_v28 }
  0x58   : > { %v214_v35 = vmul.f32 0.125, %v212_v33 }
  0x59   : > { %v213_v34 = vmul.f32 0.125, %v206_v32 }
  0x5a   : > { %v216_v37 = vadd.f32 1e-05, %v214_v35 }
  0x5b   : > { %v215_v36 = vadd.f32 1e-05, %v213_v34 }
  0x5d   : > { %412 = vrsqrt.f32 %v215_v36 }
  0x5e   : > { %414 = vrsqrt.f32 %v216_v37 }
  0x67   : > { %v413_v38 = vpop.eup %412 }
  0x68   : > { %v415_v39 = vpop.eup %414  ;;  %v219_v40 = vmul.f32 %v413_v38, %v197_v18 }
  0x69   : > { %v220_v41 = vmul.f32 %v415_v39, %v198_v19 }
  0xba   : > { %v224_v42 = vpop.permute.xlu0 %223 }
  0xbb   : > { %v226_v43 = vmul.f32 %v224_v42, %v219_v40  ;;  %v227_v44 = vmul.f32 %v224_v42, %v220_v41 }
  0xbd   : > { %228 = vst [vmem:[%s177_s6] sm:$0xff] %v226_v43  ;;  %229 = vst [vmem:[%s177_s6 + $0x8] sm:$0xff] %v227_v44 }
  0xbe   : > { %459 = shalt.err (!%p456_p6)
}
  0xbf   : > { %s460_s26 = scalar_lea.hbm %s678_s16, 256  ;;  %s464_s29 = scalar_lea.hbm %s729_s2, 512 }
  0xc0   : > { %p461_p4 = scmp.ne.s32.totalorder %s678_s16, %s460_s26  ;;  %p465_p1 = scmp.lt.u32.totalorder %s678_s16, %s729_s2 }
  0xc1   : > { %p466_p2 = scmp.lt.u32.totalorder %s464_s29, %s460_s26  ;;  %p468_p8 = scmp.lt.u32.totalorder %s460_s26, %s678_s16 }
  0xc2   : > { %p462_p10 = pnand %p461_p4, %p738_p9 }
  0xc3   : > { %p467_p5 = por %p466_p2, %p465_p1 }
  0xc4   : > { %p463_p12 = pneg %p462_p10 }
  0xc5   : > { %p469_p11 = por %p468_p8, %p467_p5 }
  0xc7   : > { %p470_p0 = pnand %p469_p11, %p463_p12 }
  0xc9   : > { %473 = shalt.err (!%p470_p0)
}
  0xca   : > { %350 = dma.vmem_to_hbm [thread:$0]  (%p738_p9), %s680_s7, 256, %s678_s16, %s231_s18  }
  0xcb PF: > { %s259_s30 = sand.u32 1, %s508_s9   ;;  %p739_p7 = scmp.ne.s32.totalorder %s734_s24, 0 }
  0xcc   : > { %p740_p13 = scmp.ge.s32.totalorder %s528_s14, 2  ;;  %s260_s4 = scalar_lea.sflag [#allocation4], %s259_s30 }
  0xce   : > { %p357_p3 = pnand %p740_p13, %p739_p7 }
  0xd0   : > { %503 = dma.done.wait (!%p357_p3), %s260_s4, 256  }
  0xd1   : > { %505 = vsyncadd (!%p357_p3), %s260_s4, 4294967040  ;;  %s18_s14 = sadd.s32 1, %s528_s14   ;;  %s741_s9 = smov %s512_s10 }
  0xd2   : > { %p15_p6 = scmp.ge.s32.totalorder %s18_s14, 4   ;;  %s742_s10 = smov %s516_s11 }
  0xd3   : > { %s743_s11 = smov %s604_s23  ;;  %s744_s12 = smov %s524_s13 }
  0xd4   : > { %s745_s13 = smov %s747_s17  ;;  %17 = sbr.rel (!%p15_p6) target bundleno = 6 (0x6), region = 73 }
  0xdb   :  { %265 = vsyncpa [#allocation3], 1 }
  0xdc   :  { %267 = vsyncpa [#allocation3 + $0x1], 1 }
  0xdd   :  { %268 = vsyncpa [#allocation4], 1 }
  0xde   :  { %270 = vsyncpa [#allocation4 + $0x1], 1 }

</bundles_post_ra>
